<compile_context>
chip_gen: v6e
topology: v6e:2x2x1
jax: 0.10.0
libtpu: 0.0.40
codegen_flags: <defaults>
</compile_context>

<pallas_src>
import jax
import jax.numpy as jnp
from jax.experimental import pallas as pl
from jax.experimental.pallas import tpu as pltpu


# ------------------------------ small helpers -------------------------------

def _cdiv(a, b):
    return -(-a // b)


def _round_up(a, b):
    return _cdiv(a, b) * b


def _vmem_budget():
    """Per-generation VMEM budget: capacity - 16 MiB headroom, capped at 112 MiB."""
    cap = 128 << 20
    try:
        info = pltpu.get_tpu_info()
        cap = int(getattr(info, "vmem_capacity_bytes", cap) or cap)
    except Exception:
        pass
    return int(max(24 << 20, min(cap - (16 << 20), 112 << 20)))


def _prefer_divisor(th, total):
    """Largest divisor of `total` <= th (so the final row slice is free), unless
    that would shrink the tile by more than 2x."""
    th = max(1, min(int(th), int(total)))
    best = 1
    for d in range(th, 0, -1):
        if total % d == 0:
            best = d
            break
    return best if best >= max(1, th // 2) else th


# ------------------------------ Conv (3x3, stride 2) ------------------------

def _make_conv_kernel(th, Wor, Cin, tn):
    C2 = 2 * Cin

    def kernel(xb_ref, xt_ref, wa_ref, wb_ref, b_ref, o_ref, acc_ref):
        # xb : (1, th, 2, Wh, 2*Cin)  row pairs owned by this tile
        # xt : (1, 1,  2, Wh, 2*Cin)  first row pair of the next tile (overlap)
        # wa : (3, 2*Cin, tn)  kw=0,1 taps     wb : (3, Cin, tn)  kw=2 tap
        # b  : (1, tn) f32             o : (1, 1, th*Wor, tn)
        # acc: (th*Wor, tn) f32 scratch

        def lhs01(ref, lo, hi, slot):
            # kw=0,1 taps: wide columns [0, Wor), all 2*Cin lanes.
            v = ref[0, lo:hi, slot, 0:Wor, :]
            return v.reshape((hi - lo) * Wor, C2)

        def lhs2(ref, lo, hi, slot):
            # kw=2 tap: wide columns [1, Wor], lanes [0, Cin).
            v = ref[0, lo:hi, slot, 1:Wor + 1, 0:Cin]
            return v.reshape((hi - lo) * Wor, Cin)

        def mm(a, w):
            return jnp.dot(a, w, preferred_element_type=jnp.float32)

        # kh = 0 : even padded row 2j   (pair j, slot 0)
        acc_ref[...] = mm(lhs01(xb_ref, 0, th, 0), wa_ref[0])
        acc_ref[...] += mm(lhs2(xb_ref, 0, th, 0), wb_ref[0])
        # kh = 1 : odd padded row 2j+1  (pair j, slot 1)
        acc_ref[...] += mm(lhs01(xb_ref, 0, th, 1), wa_ref[1])
        acc_ref[...] += mm(lhs2(xb_ref, 0, th, 1), wb_ref[1])
        # kh = 2 : even padded row 2j+2 (pair j+1, slot 0)
        if th > 1:
            body = (th - 1) * Wor
            acc_ref[0:body, :] += mm(lhs01(xb_ref, 1, th, 0), wa_ref[2])
            acc_ref[0:body, :] += mm(lhs2(xb_ref, 1, th, 0), wb_ref[2])
        lo, hi = (th - 1) * Wor, th * Wor
        acc_ref[lo:hi, :] += mm(lhs01(xt_ref, 0, 1, 0), wa_ref[2])
        acc_ref[lo:hi, :] += mm(lhs2(xt_ref, 0, 1, 0), wb_ref[2])

        o_ref[0, 0] = (acc_ref[...] + b_ref[...]).astype(o_ref.dtype)

    return kernel


def _pick_cout_tile(Cout, Cin, w_isz, budget):
    def w_bytes(tn):
        return 2 * 9 * Cin * tn * w_isz          # double-buffered resident weight
    if w_bytes(Cout) <= budget // 3:
        return Cout
    for tn in (512, 384, 256, 128):
        if tn < Cout and Cout % tn == 0 and w_bytes(tn) <= budget // 3:
            return tn
    return Cout  # TODO(synk): K-tile the weight instead (see module header).


def _pick_conv_tile_rows(Ho, Wor, Cin, tn, in_isz, out_isz, budget, N):
    Wh = Wor + 1
    fixed = (2 * 9 * Cin * tn * in_isz          # resident weights (double-buffered)
             + 2 * 2 * Wh * 2 * Cin * in_isz    # overlap tail view (double-buffered)
             + (1 << 20))                       # bias / semaphores / slack
    per_row = (2 * 2 * Wh * 2 * Cin * in_isz    # input row pairs (double-buffered)
               + 3 * Wor * 2 * Cin * in_isz     # live matmul lhs operands (approx)
               + 2 * Wor * tn * out_isz         # output rows (double-buffered)
               + 3 * Wor * tn * 4)              # f32 accumulator + live dot results
    avail = max(int(0.75 * budget) - fixed, per_row)
    th = max(1, avail // per_row)
    th = min(th, Ho, 512, max(1, 4096 // Wor))  # keep the MXU M dim reasonable
    if N == 1 and Ho > 1:
        th = min(th, _cdiv(Ho, 2))              # >=2 grid steps for megacore
    return _prefer_divisor(th, Ho)


def _conv_downsample_nhwc(x_nhwc, weight, bias, padding, *,
                          tile_rows=None, mxu_dtype=None):
    N, H, W, Cin = x_nhwc.shape
    Cout = weight.shape[0]
    p = int(padding)
    assert H + 2 * p >= 3 and W + 2 * p >= 3, "input too small for 3x3 stride-2 conv"
    Ho = (H + 2 * p - 3) // 2 + 1
    Wo = (W + 2 * p - 3) // 2 + 1

    out_dtype = x_nhwc.dtype
    comp_dtype = jnp.dtype(mxu_dtype) if mxu_dtype is not None else jnp.dtype(out_dtype)
    in_isz = comp_dtype.itemsize
    out_isz = jnp.dtype(out_dtype).itemsize

    budget = _vmem_budget()
    Wor = _round_up(Wo, 8)               # sublane-aligned output width (extra cols
    Wh = Wor + 1                         # compute over zeros, sliced off for free)

    tn = _pick_cout_tile(Cout, Cin, in_isz, budget)
    ncb = Cout // tn

    if tile_rows is not None:
        th = max(1, min(int(tile_rows), Ho))
    else:
        th = _pick_conv_tile_rows(Ho, Wor, Cin, tn, in_isz, out_isz, budget, N)
    nb = _cdiv(Ho, th)

    HP2 = nb * th + 1                    # row pairs (always enough for the tail view)
    Hp = 2 * HP2
    Wp = 2 * Wh

    # One fused HBM pass: halo pad + MXU dtype cast + free row-major reshape.
    xp = jnp.pad(x_nhwc, ((0, 0), (p, Hp - H - p), (p, Wp - W - p), (0, 0)))
    if xp.dtype != comp_dtype:
        xp = xp.astype(comp_dtype)
    xpr = xp.reshape(N, HP2, 2, Wh, 2 * Cin)

    # Weight layout: [Cout, Cin, kh, kw] -> (kh, kw, Cin, Cout); split kw taps so
    # every matmul operand is a contiguous lane block of the wide-column view.
    wt = jnp.transpose(weight, (2, 3, 1, 0))
    wa = wt[:, 0:2].reshape(3, 2 * Cin, Cout).astype(comp_dtype)   # kw=0,1
    wb = wt[:, 2].astype(comp_dtype)                               # kw=2
    b2 = bias.reshape(1, Cout).astype(jnp.float32)

    kernel = _make_conv_kernel(th, Wor, Cin, tn)

    out = pl.pallas_call(
        kernel,
        out_shape=jax.ShapeDtypeStruct((N, nb, th * Wor, Cout), out_dtype),
        grid=(N, ncb, nb),
        in_specs=[
            # row pairs [i*th, (i+1)*th) of the padded input
            pl.BlockSpec((1, th, 2, Wh, 2 * Cin), lambda n, j, i: (n, i, 0, 0, 0)),
            # overlap: first row pair of the next tile (same array, 2nd view)
            pl.BlockSpec((1, 1, 2, Wh, 2 * Cin),
                         lambda n, j, i: (n, (i + 1) * th, 0, 0, 0)),
            # weights / bias stay VMEM resident (index changes only with j)
            pl.BlockSpec((3, 2 * Cin, tn), lambda n, j, i: (0, 0, j)),
            pl.BlockSpec((3, Cin, tn), lambda n, j, i: (0, 0, j)),
            pl.BlockSpec((1, tn), lambda n, j, i: (0, j)),
        ],
        out_specs=pl.BlockSpec((1, 1, th * Wor, tn), lambda n, j, i: (n, i, 0, j)),
        scratch_shapes=[pltpu.VMEM((th * Wor, tn), jnp.float32)],
        compiler_params=pltpu.CompilerParams(
            dimension_semantics=("parallel", "parallel", "parallel"),
            vmem_limit_bytes=budget),
    )(xpr, xpr, wa, wb, b2)

    out = out.reshape(N, nb * th, Wor, Cout)
    return out[:, :Ho, :Wo, :]


# ------------------------------ 2x2 average pool ----------------------------

def _make_pool_kernel(th, Wo, C):
    def kernel(x_ref, o_ref):
        # x: (1, 2*th, Wo, 2*C) -> four 2x2 taps read in-kernel (single pass).
        x = x_ref[0]
        x = x.reshape(th, 2, Wo, 2 * C)            # leading-dim split (free)
        h0 = x[:, 0, :, 0:C] + x[:, 0, :, C:2 * C]  # pairwise adds in input dtype
        h1 = x[:, 1, :, 0:C] + x[:, 1, :, C:2 * C]
        s = h0.astype(jnp.float32) + h1.astype(jnp.float32)
        o_ref[0] = (s * 0.25).astype(o_ref.dtype)

    return kernel


def _pick_pool_tile_rows(Ho, Wo, C, isz, budget, N):
    per_row = (2 * 2 * Wo * 2 * C * isz     # input (double-buffered)
               + 2 * Wo * C * isz           # output (double-buffered)
               + 4 * Wo * C * 4)            # f32 temporaries
    th = max(1, int(0.6 * budget) // max(per_row, 1))
    th = min(th, Ho, 2048)
    if N == 1 and Ho > 1:
        th = min(th, _cdiv(Ho, 2))
    return _prefer_divisor(th, Ho)


def _avgpool_downsample_nhwc(x_nhwc, *, tile_rows=None):
    N, H, W, C = x_nhwc.shape
    Ho, Wo = H // 2, W // 2
    assert Ho >= 1 and Wo >= 1
    x = x_nhwc[:, :2 * Ho, :2 * Wo, :]       # PyTorch AvgPool2d floor behavior
    isz = jnp.dtype(x.dtype).itemsize

    budget = _vmem_budget()
    if tile_rows is not None:
        th = max(1, min(int(tile_rows), Ho))
    else:
        th = _pick_pool_tile_rows(Ho, Wo, C, isz, budget, N)
    nb = _cdiv(Ho, th)
    if nb * th > Ho:                          # pad rows so row tiles are full
        x = jnp.pad(x, ((0, 0), (0, 2 * (nb * th - Ho)), (0, 0), (0, 0)))
    xr = x.reshape(N, 2 * nb * th, Wo, 2 * C)  # free reinterpretation

    out = pl.pallas_call(
        _make_pool_kernel(th, Wo, C),
        out_shape=jax.ShapeDtypeStruct((N, nb * th, Wo, C), x.dtype),
        grid=(N, nb),
        in_specs=[pl.BlockSpec((1, 2 * th, Wo, 2 * C), lambda n, i: (n, i, 0, 0))],
        out_specs=pl.BlockSpec((1, th, Wo, C), lambda n, i: (n, i, 0, 0)),
        compiler_params=pltpu.CompilerParams(
            dimension_semantics=("parallel", "parallel"),
            vmem_limit_bytes=budget),
    )(xr)
    return out[:, :Ho]


# ------------------------------ Downsample module ---------------------------

class Downsample:
    """Pallas port of the PyTorch Downsample layer (dims=2 only).

    use_conv=True : Conv2d(channels, out_channels, k=3, stride=2, padding=pad)
    use_conv=False: AvgPool2d(kernel_size=2, stride=2) (requires C_in == C_out)

    mxu_dtype=jnp.bfloat16 feeds the MXU bf16 with f32 accumulation (recommended
    on v5e/v6e/v7x; looser numerics vs the f32 reference).  Default keeps the
    input dtype for exactness.
    """

    def __init__(self, channels, use_conv, dims=2, out_channels=None,
                 padding=1, key=None, dtype=jnp.float32, mxu_dtype=None,
                 tile_rows=None):
        assert dims == 2, "only dims=2 implemented"  # TODO(synk): dims=1/3 variants
        self.channels = channels
        self.out_channels = out_channels or channels
        self.use_conv = use_conv
        self.padding = padding
        self.dtype = dtype
        self.mxu_dtype = mxu_dtype
        self.tile_rows = tile_rows        # None -> auto-size from the VMEM budget
        if use_conv:
            key = key if key is not None else jax.random.PRNGKey(0)
            kw, kb = jax.random.split(key)
            fan_in = channels * 3 * 3
            bound = 1.0 / (fan_in ** 0.5)
            # PyTorch Conv2d weight layout: [Cout, Cin, kH, kW]
            self.weight = jax.random.uniform(
                kw, (self.out_channels, channels, 3, 3),
                minval=-bound, maxval=bound, dtype=dtype)
            self.bias = jax.random.uniform(
                kb, (self.out_channels,), minval=-bound, maxval=bound, dtype=dtype)
        else:
            assert self.channels == self.out_channels
            self.weight = None
            self.bias = None

    def __call__(self, x, channels_last=False):
        # NCHW by default (PyTorch convention).  channels_last=True feeds and
        # returns NHWC directly, skipping the two HBM transpose passes.
        if channels_last:
            assert x.shape[-1] == self.channels
            x_nhwc = x
        else:
            assert x.shape[1] == self.channels
            x_nhwc = jnp.transpose(x, (0, 2, 3, 1))

        if self.use_conv:
            y = _conv_downsample_nhwc(
                x_nhwc, self.weight, self.bias, self.padding,
                tile_rows=self.tile_rows, mxu_dtype=self.mxu_dtype)
        else:
            y = _avgpool_downsample_nhwc(x_nhwc, tile_rows=self.tile_rows)

        return y if channels_last else jnp.transpose(y, (0, 3, 1, 2))


# ------------------------------ Reference checks -----------------------------

def _ref_conv(x, w, b, pad):
    out = jax.lax.conv_general_dilated(
        x, w, window_strides=(2, 2), padding=[(pad, pad), (pad, pad)],
        dimension_numbers=("NCHW", "OIHW", "NCHW"))
    return out + b.reshape(1, -1, 1, 1)


def _ref_avgpool(x):
    N, C, H, W = x.shape
    Ho, Wo = H // 2, W // 2
    x = x[:, :, :2 * Ho, :2 * Wo]
    return x.reshape(N, C, Ho, 2, Wo, 2).mean(axis=(3, 5))


if __name__ == "__main__":
    key = jax.random.PRNGKey(0)
    kx, kp, kx2 = jax.random.split(key, 3)
    x = jax.random.normal(kx, (2, 4, 16, 16), dtype=jnp.float32)

    # Conv path: channels=4 -> out_channels=8, stride 2, padding 1.
    ds_conv = Downsample(4, use_conv=True, dims=2, out_channels=8, padding=1, key=kp)
    y = jax.block_until_ready(ds_conv(x))
    assert y.shape == (2, 8, 8, 8), y.shape
    ref = _ref_conv(x, ds_conv.weight, ds_conv.bias, 1)
    assert jnp.allclose(y, ref, atol=1e-4, rtol=1e-4)

    # Forced small row tile: exercises the multi-tile grid, the overlap tail
    # view and non-dividing row tiles (Ho=8, th=3).
    ds_conv_t = Downsample(4, use_conv=True, dims=2, out_channels=8,
                           padding=1, key=kp, tile_rows=3)
    y_t = jax.block_until_ready(ds_conv_t(x))
    assert jnp.allclose(y_t, ref, atol=1e-4, rtol=1e-4)

    # channels_last fast path (skips the NCHW<->NHWC HBM passes).
    y_cl = jax.block_until_ready(
        ds_conv(jnp.transpose(x, (0, 2, 3, 1)), channels_last=True))
    assert jnp.allclose(jnp.transpose(y_cl, (0, 3, 1, 2)), ref, atol=1e-4, rtol=1e-4)

    # Odd spatial dims, padding=0, batch 1: junk row/col padding + megacore clamp.
    x2 = jax.random.normal(kx2, (1, 4, 15, 13), dtype=jnp.float32)
    ds_conv2 = Downsample(4, use_conv=True, dims=2, out_channels=6, padding=0, key=kp)
    y2 = jax.block_until_ready(ds_conv2(x2))
    ref2 = _ref_conv(x2, ds_conv2.weight, ds_conv2.bias, 0)
    assert y2.shape == ref2.shape == (1, 6, 7, 6), (y2.shape, ref2.shape)
    assert jnp.allclose(y2, ref2, atol=1e-4, rtol=1e-4)

    # bf16 MXU path (recommended on v5e/v6e/v7x) — looser tolerance.
    ds_conv_bf = Downsample(4, use_conv=True, dims=2, out_channels=8,
                            padding=1, key=kp, mxu_dtype=jnp.bfloat16)
    y_bf = jax.block_until_ready(ds_conv_bf(x))
    assert jnp.allclose(y_bf, ref, atol=1e-1, rtol=1e-1)

    # AvgPool path: channels=4 -> 4, 2x2 stride 2.
    ds_pool = Downsample(4, use_conv=False, dims=2)
    yp = jax.block_until_ready(ds_pool(x))
    refp = _ref_avgpool(x)
    assert yp.shape == (2, 4, 8, 8), yp.shape
    assert jnp.allclose(yp, refp, atol=1e-5, rtol=1e-5)

    # AvgPool with a non-dividing row tile.
    ds_pool_t = Downsample(4, use_conv=False, dims=2, tile_rows=3)
    ypt = jax.block_until_ready(ds_pool_t(x))
    assert jnp.allclose(ypt, refp, atol=1e-5, rtol=1e-5)

    # AvgPool floor behavior on odd spatial dims.
    yp2 = jax.block_until_ready(ds_pool(x2))
    refp2 = _ref_avgpool(x2)
    assert yp2.shape == (1, 4, 7, 6), yp2.shape
    assert jnp.allclose(yp2, refp2, atol=1e-5, rtol=1e-5)

    print("KERNEL_OK")
</pallas_src>

<mosaic_0001>
module attributes {stable_mosaic.version = 11 : i64} {
  func.func @kernel(%arg0: i32, %arg1: i32, %arg2: i32, %arg3: memref<1x8x2x9x8xf32, #tpu.memory_space<vmem>>, %arg4: memref<1x1x2x9x8xf32, #tpu.memory_space<vmem>>, %arg5: memref<3x8x8xf32, #tpu.memory_space<vmem>>, %arg6: memref<3x4x8xf32, #tpu.memory_space<vmem>>, %arg7: memref<1x8xf32, #tpu.memory_space<vmem>>, %arg8: memref<1x1x64x8xf32, #tpu.memory_space<vmem>>, %arg9: memref<64x8xf32, #tpu.memory_space<vmem>>) attributes {dimension_semantics = [#tpu.dimension_semantics<parallel>, #tpu.dimension_semantics<parallel>, #tpu.dimension_semantics<parallel>], iteration_bounds = array<i64: 2, 1, 1>, scalar_prefetch = 0 : i64, scratch_operands = 1 : i64, tpu.core_type = #tpu.core_type<tc>, window_params = [{transform_indices = @transform_0, window_bounds = array<i64: 1, 8, 2, 9, 8>}, {transform_indices = @transform_1, window_bounds = array<i64: 1, 1, 2, 9, 8>}, {transform_indices = @transform_2, window_bounds = array<i64: 3, 8, 8>}, {transform_indices = @transform_3, window_bounds = array<i64: 3, 4, 8>}, {transform_indices = @transform_4, window_bounds = array<i64: 1, 8>}, {transform_indices = @transform_5, window_bounds = array<i64: 1, 1, 64, 8>}]} {
    %c0 = arith.constant 0 : index
    %c0_0 = arith.constant 0 : index
    %c0_1 = arith.constant 0 : index
    %c0_2 = arith.constant 0 : index
    %c0_3 = arith.constant 0 : index
    %0 = vector.load %arg3[%c0, %c0_0, %c0_1, %c0_2, %c0_3] : memref<1x8x2x9x8xf32, #tpu.memory_space<vmem>>, vector<1x8x1x8x8xf32>
    %1 = vector.shape_cast %0 : vector<1x8x1x8x8xf32> to vector<8x8x8xf32>
    %2 = vector.shape_cast %1 : vector<8x8x8xf32> to vector<64x8xf32>
    %c0_4 = arith.constant 0 : index
    %c0_5 = arith.constant 0 : index
    %c0_6 = arith.constant 0 : index
    %3 = vector.load %arg5[%c0_4, %c0_5, %c0_6] : memref<3x8x8xf32, #tpu.memory_space<vmem>>, vector<1x8x8xf32>
    %4 = vector.shape_cast %3 : vector<1x8x8xf32> to vector<8x8xf32>
    %cst = arith.constant dense<0.000000e+00> : vector<64x8xf32>
    %5 = tpu.matmul %2, %4, %cst {dimension_numbers = #tpu.dot_dimension_numbers<[1], [0], [0], [1], [0, 0, 1, 1], [], []>} : vector<64x8xf32>, vector<8x8xf32>, vector<64x8xf32> -> vector<64x8xf32>
    %c0_7 = arith.constant 0 : index
    %c0_8 = arith.constant 0 : index
    %6 = vector.load %arg9[%c0_7, %c0_8] : memref<64x8xf32, #tpu.memory_space<vmem>>, vector<64x8xf32>
    tpu.vector_store %arg9[%c0_7, %c0_8], %5 {strides = array<i32>} : memref<64x8xf32, #tpu.memory_space<vmem>>, vector<64x8xf32>,
    %c0_9 = arith.constant 0 : index
    %c0_10 = arith.constant 0 : index
    %7 = vector.load %arg9[%c0_9, %c0_10] : memref<64x8xf32, #tpu.memory_space<vmem>>, vector<64x8xf32>
    %c0_11 = arith.constant 0 : index
    %c0_12 = arith.constant 0 : index
    %c0_13 = arith.constant 0 : index
    %c1 = arith.constant 1 : index
    %c0_14 = arith.constant 0 : index
    %8 = vector.load %arg3[%c0_11, %c0_12, %c0_13, %c1, %c0_14] : memref<1x8x2x9x8xf32, #tpu.memory_space<vmem>>, vector<1x8x1x8x4xf32>
    %9 = vector.shape_cast %8 : vector<1x8x1x8x4xf32> to vector<8x8x4xf32>
    %10 = vector.shape_cast %9 : vector<8x8x4xf32> to vector<64x4xf32>
    %c0_15 = arith.constant 0 : index
    %c0_16 = arith.constant 0 : index
    %c0_17 = arith.constant 0 : index
    %11 = vector.load %arg6[%c0_15, %c0_16, %c0_17] : memref<3x4x8xf32, #tpu.memory_space<vmem>>, vector<1x4x8xf32>
    %12 = vector.shape_cast %11 : vector<1x4x8xf32> to vector<4x8xf32>
    %cst_18 = arith.constant dense<0.000000e+00> : vector<64x8xf32>
    %13 = tpu.matmul %10, %12, %cst_18 {dimension_numbers = #tpu.dot_dimension_numbers<[1], [0], [0], [1], [0, 0, 1, 1], [], []>} : vector<64x4xf32>, vector<4x8xf32>, vector<64x8xf32> -> vector<64x8xf32>
    %14 = arith.addf %7, %13 : vector<64x8xf32>
    %c0_19 = arith.constant 0 : index
    %c0_20 = arith.constant 0 : index
    %15 = vector.load %arg9[%c0_19, %c0_20] : memref<64x8xf32, #tpu.memory_space<vmem>>, vector<64x8xf32>
    tpu.vector_store %arg9[%c0_19, %c0_20], %14 {strides = array<i32>} : memref<64x8xf32, #tpu.memory_space<vmem>>, vector<64x8xf32>,
    %c0_21 = arith.constant 0 : index
    %c0_22 = arith.constant 0 : index
    %16 = vector.load %arg9[%c0_21, %c0_22] : memref<64x8xf32, #tpu.memory_space<vmem>>, vector<64x8xf32>
    %c0_23 = arith.constant 0 : index
    %c0_24 = arith.constant 0 : index
    %c1_25 = arith.constant 1 : index
    %c0_26 = arith.constant 0 : index
    %c0_27 = arith.constant 0 : index
    %17 = vector.load %arg3[%c0_23, %c0_24, %c1_25, %c0_26, %c0_27] : memref<1x8x2x9x8xf32, #tpu.memory_space<vmem>>, vector<1x8x1x8x8xf32>
    %18 = vector.shape_cast %17 : vector<1x8x1x8x8xf32> to vector<8x8x8xf32>
    %19 = vector.shape_cast %18 : vector<8x8x8xf32> to vector<64x8xf32>
    %c1_28 = arith.constant 1 : index
    %c0_29 = arith.constant 0 : index
    %c0_30 = arith.constant 0 : index
    %20 = vector.load %arg5[%c1_28, %c0_29, %c0_30] : memref<3x8x8xf32, #tpu.memory_space<vmem>>, vector<1x8x8xf32>
    %21 = vector.shape_cast %20 : vector<1x8x8xf32> to vector<8x8xf32>
    %cst_31 = arith.constant dense<0.000000e+00> : vector<64x8xf32>
    %22 = tpu.matmul %19, %21, %cst_31 {dimension_numbers = #tpu.dot_dimension_numbers<[1], [0], [0], [1], [0, 0, 1, 1], [], []>} : vector<64x8xf32>, vector<8x8xf32>, vector<64x8xf32> -> vector<64x8xf32>
    %23 = arith.addf %16, %22 : vector<64x8xf32>
    %c0_32 = arith.constant 0 : index
    %c0_33 = arith.constant 0 : index
    %24 = vector.load %arg9[%c0_32, %c0_33] : memref<64x8xf32, #tpu.memory_space<vmem>>, vector<64x8xf32>
    tpu.vector_store %arg9[%c0_32, %c0_33], %23 {strides = array<i32>} : memref<64x8xf32, #tpu.memory_space<vmem>>, vector<64x8xf32>,
    %c0_34 = arith.constant 0 : index
    %c0_35 = arith.constant 0 : index
    %25 = vector.load %arg9[%c0_34, %c0_35] : memref<64x8xf32, #tpu.memory_space<vmem>>, vector<64x8xf32>
    %c0_36 = arith.constant 0 : index
    %c0_37 = arith.constant 0 : index
    %c1_38 = arith.constant 1 : index
    %c1_39 = arith.constant 1 : index
    %c0_40 = arith.constant 0 : index
    %26 = vector.load %arg3[%c0_36, %c0_37, %c1_38, %c1_39, %c0_40] : memref<1x8x2x9x8xf32, #tpu.memory_space<vmem>>, vector<1x8x1x8x4xf32>
    %27 = vector.shape_cast %26 : vector<1x8x1x8x4xf32> to vector<8x8x4xf32>
    %28 = vector.shape_cast %27 : vector<8x8x4xf32> to vector<64x4xf32>
    %c1_41 = arith.constant 1 : index
    %c0_42 = arith.constant 0 : index
    %c0_43 = arith.constant 0 : index
    %29 = vector.load %arg6[%c1_41, %c0_42, %c0_43] : memref<3x4x8xf32, #tpu.memory_space<vmem>>, vector<1x4x8xf32>
    %30 = vector.shape_cast %29 : vector<1x4x8xf32> to vector<4x8xf32>
    %cst_44 = arith.constant dense<0.000000e+00> : vector<64x8xf32>
    %31 = tpu.matmul %28, %30, %cst_44 {dimension_numbers = #tpu.dot_dimension_numbers<[1], [0], [0], [1], [0, 0, 1, 1], [], []>} : vector<64x4xf32>, vector<4x8xf32>, vector<64x8xf32> -> vector<64x8xf32>
    %32 = arith.addf %25, %31 : vector<64x8xf32>
    %c0_45 = arith.constant 0 : index
    %c0_46 = arith.constant 0 : index
    %33 = vector.load %arg9[%c0_45, %c0_46] : memref<64x8xf32, #tpu.memory_space<vmem>>, vector<64x8xf32>
    tpu.vector_store %arg9[%c0_45, %c0_46], %32 {strides = array<i32>} : memref<64x8xf32, #tpu.memory_space<vmem>>, vector<64x8xf32>,
    %c0_47 = arith.constant 0 : index
    %c0_48 = arith.constant 0 : index
    %34 = vector.load %arg9[%c0_47, %c0_48] : memref<64x8xf32, #tpu.memory_space<vmem>>, vector<56x8xf32>
    %c0_49 = arith.constant 0 : index
    %c1_50 = arith.constant 1 : index
    %c0_51 = arith.constant 0 : index
    %c0_52 = arith.constant 0 : index
    %c0_53 = arith.constant 0 : index
    %35 = vector.load %arg3[%c0_49, %c1_50, %c0_51, %c0_52, %c0_53] : memref<1x8x2x9x8xf32, #tpu.memory_space<vmem>>, vector<1x7x1x8x8xf32>
    %36 = vector.shape_cast %35 : vector<1x7x1x8x8xf32> to vector<7x8x8xf32>
    %37 = vector.shape_cast %36 : vector<7x8x8xf32> to vector<56x8xf32>
    %c2 = arith.constant 2 : index
    %c0_54 = arith.constant 0 : index
    %c0_55 = arith.constant 0 : index
    %38 = vector.load %arg5[%c2, %c0_54, %c0_55] : memref<3x8x8xf32, #tpu.memory_space<vmem>>, vector<1x8x8xf32>
    %39 = vector.shape_cast %38 : vector<1x8x8xf32> to vector<8x8xf32>
    %cst_56 = arith.constant dense<0.000000e+00> : vector<56x8xf32>
    %40 = tpu.matmul %37, %39, %cst_56 {dimension_numbers = #tpu.dot_dimension_numbers<[1], [0], [0], [1], [0, 0, 1, 1], [], []>} : vector<56x8xf32>, vector<8x8xf32>, vector<56x8xf32> -> vector<56x8xf32>
    %41 = arith.addf %34, %40 : vector<56x8xf32>
    %c0_57 = arith.constant 0 : index
    %c0_58 = arith.constant 0 : index
    %42 = vector.load %arg9[%c0_57, %c0_58] : memref<64x8xf32, #tpu.memory_space<vmem>>, vector<56x8xf32>
    tpu.vector_store %arg9[%c0_57, %c0_58], %41 {strides = array<i32>} : memref<64x8xf32, #tpu.memory_space<vmem>>, vector<56x8xf32>,
    %c0_59 = arith.constant 0 : index
    %c0_60 = arith.constant 0 : index
    %43 = vector.load %arg9[%c0_59, %c0_60] : memref<64x8xf32, #tpu.memory_space<vmem>>, vector<56x8xf32>
    %c0_61 = arith.constant 0 : index
    %c1_62 = arith.constant 1 : index
    %c0_63 = arith.constant 0 : index
    %c1_64 = arith.constant 1 : index
    %c0_65 = arith.constant 0 : index
    %44 = vector.load %arg3[%c0_61, %c1_62, %c0_63, %c1_64, %c0_65] : memref<1x8x2x9x8xf32, #tpu.memory_space<vmem>>, vector<1x7x1x8x4xf32>
    %45 = vector.shape_cast %44 : vector<1x7x1x8x4xf32> to vector<7x8x4xf32>
    %46 = vector.shape_cast %45 : vector<7x8x4xf32> to vector<56x4xf32>
    %c2_66 = arith.constant 2 : index
    %c0_67 = arith.constant 0 : index
    %c0_68 = arith.constant 0 : index
    %47 = vector.load %arg6[%c2_66, %c0_67, %c0_68] : memref<3x4x8xf32, #tpu.memory_space<vmem>>, vector<1x4x8xf32>
    %48 = vector.shape_cast %47 : vector<1x4x8xf32> to vector<4x8xf32>
    %cst_69 = arith.constant dense<0.000000e+00> : vector<56x8xf32>
    %49 = tpu.matmul %46, %48, %cst_69 {dimension_numbers = #tpu.dot_dimension_numbers<[1], [0], [0], [1], [0, 0, 1, 1], [], []>} : vector<56x4xf32>, vector<4x8xf32>, vector<56x8xf32> -> vector<56x8xf32>
    %50 = arith.addf %43, %49 : vector<56x8xf32>
    %c0_70 = arith.constant 0 : index
    %c0_71 = arith.constant 0 : index
    %51 = vector.load %arg9[%c0_70, %c0_71] : memref<64x8xf32, #tpu.memory_space<vmem>>, vector<56x8xf32>
    tpu.vector_store %arg9[%c0_70, %c0_71], %50 {strides = array<i32>} : memref<64x8xf32, #tpu.memory_space<vmem>>, vector<56x8xf32>,
    %c56 = arith.constant 56 : index
    %c0_72 = arith.constant 0 : index
    %52 = vector.load %arg9[%c56, %c0_72] : memref<64x8xf32, #tpu.memory_space<vmem>>, vector<8x8xf32>
    %c0_73 = arith.constant 0 : index
    %c0_74 = arith.constant 0 : index
    %c0_75 = arith.constant 0 : index
    %c0_76 = arith.constant 0 : index
    %c0_77 = arith.constant 0 : index
    %53 = vector.load %arg4[%c0_73, %c0_74, %c0_75, %c0_76, %c0_77] : memref<1x1x2x9x8xf32, #tpu.memory_space<vmem>>, vector<1x1x1x8x8xf32>
    %54 = vector.shape_cast %53 : vector<1x1x1x8x8xf32> to vector<1x8x8xf32>
    %55 = vector.shape_cast %54 : vector<1x8x8xf32> to vector<8x8xf32>
    %c2_78 = arith.constant 2 : index
    %c0_79 = arith.constant 0 : index
    %c0_80 = arith.constant 0 : index
    %56 = vector.load %arg5[%c2_78, %c0_79, %c0_80] : memref<3x8x8xf32, #tpu.memory_space<vmem>>, vector<1x8x8xf32>
    %57 = vector.shape_cast %56 : vector<1x8x8xf32> to vector<8x8xf32>
    %cst_81 = arith.constant dense<0.000000e+00> : vector<8x8xf32>
    %58 = tpu.matmul %55, %57, %cst_81 {dimension_numbers = #tpu.dot_dimension_numbers<[1], [0], [0], [1], [0, 0, 1, 1], [], []>} : vector<8x8xf32>, vector<8x8xf32>, vector<8x8xf32> -> vector<8x8xf32>
    %59 = arith.addf %52, %58 : vector<8x8xf32>
    %c56_82 = arith.constant 56 : index
    %c0_83 = arith.constant 0 : index
    %60 = vector.load %arg9[%c56_82, %c0_83] : memref<64x8xf32, #tpu.memory_space<vmem>>, vector<8x8xf32>
    tpu.vector_store %arg9[%c56_82, %c0_83], %59 {strides = array<i32>} : memref<64x8xf32, #tpu.memory_space<vmem>>, vector<8x8xf32>,
    %c56_84 = arith.constant 56 : index
    %c0_85 = arith.constant 0 : index
    %61 = vector.load %arg9[%c56_84, %c0_85] : memref<64x8xf32, #tpu.memory_space<vmem>>, vector<8x8xf32>
    %c0_86 = arith.constant 0 : index
    %c0_87 = arith.constant 0 : index
    %c0_88 = arith.constant 0 : index
    %c1_89 = arith.constant 1 : index
    %c0_90 = arith.constant 0 : index
    %62 = vector.load %arg4[%c0_86, %c0_87, %c0_88, %c1_89, %c0_90] : memref<1x1x2x9x8xf32, #tpu.memory_space<vmem>>, vector<1x1x1x8x4xf32>
    %63 = vector.shape_cast %62 : vector<1x1x1x8x4xf32> to vector<1x8x4xf32>
    %64 = vector.shape_cast %63 : vector<1x8x4xf32> to vector<8x4xf32>
    %c2_91 = arith.constant 2 : index
    %c0_92 = arith.constant 0 : index
    %c0_93 = arith.constant 0 : index
    %65 = vector.load %arg6[%c2_91, %c0_92, %c0_93] : memref<3x4x8xf32, #tpu.memory_space<vmem>>, vector<1x4x8xf32>
    %66 = vector.shape_cast %65 : vector<1x4x8xf32> to vector<4x8xf32>
    %cst_94 = arith.constant dense<0.000000e+00> : vector<8x8xf32>
    %67 = tpu.matmul %64, %66, %cst_94 {dimension_numbers = #tpu.dot_dimension_numbers<[1], [0], [0], [1], [0, 0, 1, 1], [], []>} : vector<8x4xf32>, vector<4x8xf32>, vector<8x8xf32> -> vector<8x8xf32>
    %68 = arith.addf %61, %67 : vector<8x8xf32>
    %c56_95 = arith.constant 56 : index
    %c0_96 = arith.constant 0 : index
    %69 = vector.load %arg9[%c56_95, %c0_96] : memref<64x8xf32, #tpu.memory_space<vmem>>, vector<8x8xf32>
    tpu.vector_store %arg9[%c56_95, %c0_96], %68 {strides = array<i32>} : memref<64x8xf32, #tpu.memory_space<vmem>>, vector<8x8xf32>,
    %c0_97 = arith.constant 0 : index
    %c0_98 = arith.constant 0 : index
    %70 = vector.load %arg9[%c0_97, %c0_98] : memref<64x8xf32, #tpu.memory_space<vmem>>, vector<64x8xf32>
    %c0_99 = arith.constant 0 : index
    %c0_100 = arith.constant 0 : index
    %71 = vector.load %arg7[%c0_99, %c0_100] : memref<1x8xf32, #tpu.memory_space<vmem>>, vector<1x8xf32>
    %72 = vector.broadcast %71 : vector<1x8xf32> to vector<64x8xf32>
    %73 = arith.addf %70, %72 : vector<64x8xf32>
    %c0_101 = arith.constant 0 : index
    %c0_102 = arith.constant 0 : index
    %c0_103 = arith.constant 0 : index
    %c0_104 = arith.constant 0 : index
    %74 = vector.load %arg8[%c0_101, %c0_102, %c0_103, %c0_104] : memref<1x1x64x8xf32, #tpu.memory_space<vmem>>, vector<1x1x64x8xf32>
    %75 = vector.shape_cast %74 : vector<1x1x64x8xf32> to vector<64x8xf32>
    %76 = vector.shape_cast %73 : vector<64x8xf32> to vector<1x1x64x8xf32>
    tpu.vector_store %arg8[%c0_101, %c0_102, %c0_103, %c0_104], %76 {strides = array<i32>} : memref<1x1x64x8xf32, #tpu.memory_space<vmem>>, vector<1x1x64x8xf32>,
    return
  }
  func.func @transform_0(%arg0: i32, %arg1: i32, %arg2: i32) -> (i32, i32, i32, i32, i32) {
    %c0_i32 = arith.constant 0 : i32
    %c0_i32_0 = arith.constant 0 : i32
    %c0_i32_1 = arith.constant 0 : i32
    %c0_i32_2 = arith.constant 0 : i32
    return %arg0, %arg2, %c0_i32, %c0_i32_0, %c0_i32_1 : i32, i32, i32, i32, i32
  }
  func.func @transform_1(%arg0: i32, %arg1: i32, %arg2: i32) -> (i32, i32, i32, i32, i32) {
    %c1_i32 = arith.constant 1 : i32
    %0 = arith.addi %arg2, %c1_i32 : i32
    %c8_i32 = arith.constant 8 : i32
    %1 = arith.muli %0, %c8_i32 : i32
    %c0_i32 = arith.constant 0 : i32
    %c0_i32_0 = arith.constant 0 : i32
    %c0_i32_1 = arith.constant 0 : i32
    %c0_i32_2 = arith.constant 0 : i32
    return %arg0, %1, %c0_i32, %c0_i32_0, %c0_i32_1 : i32, i32, i32, i32, i32
  }
  func.func @transform_2(%arg0: i32, %arg1: i32, %arg2: i32) -> (i32, i32, i32) {
    %c0_i32 = arith.constant 0 : i32
    %c0_i32_0 = arith.constant 0 : i32
    %c0_i32_1 = arith.constant 0 : i32
    return %c0_i32, %c0_i32_0, %arg1 : i32, i32, i32
  }
  func.func @transform_3(%arg0: i32, %arg1: i32, %arg2: i32) -> (i32, i32, i32) {
    %c0_i32 = arith.constant 0 : i32
    %c0_i32_0 = arith.constant 0 : i32
    %c0_i32_1 = arith.constant 0 : i32
    return %c0_i32, %c0_i32_0, %arg1 : i32, i32, i32
  }
  func.func @transform_4(%arg0: i32, %arg1: i32, %arg2: i32) -> (i32, i32) {
    %c0_i32 = arith.constant 0 : i32
    %c0_i32_0 = arith.constant 0 : i32
    return %c0_i32, %arg1 : i32, i32
  }
  func.func @transform_5(%arg0: i32, %arg1: i32, %arg2: i32) -> (i32, i32, i32, i32) {
    %c0_i32 = arith.constant 0 : i32
    %c0_i32_0 = arith.constant 0 : i32
    return %arg0, %arg2, %c0_i32, %arg1 : i32, i32, i32, i32
  }
}

</mosaic_0001>

<bundles_post_ra>
// kernel: tpu_custom_call.1
= control target key start
LH: loop header
LB: loop body
LE: loop exit
PB: predicated region body
PF: predicated region fallthrough
CT: control target
= control target key end

     0   :  { %s2075_s18 = smov 0   ;;  %s2077_s19 = smov 0   ;;  %s2389_s0 = inlined_call_operand.vmem [shape: f32[2,9,2,9,8], index: 0, kind: input, shape index: {}]   ;;  %s2390_s1 = inlined_call_operand.vmem [shape: f32[2,9,2,9,8], index: 1, kind: input, shape index: {}]   ;;  %s2391_s2 = inlined_call_operand.vmem [shape: f32[3,8,8], index: 2, kind: input, shape index: {}]   ;;  %s2392_s3 = inlined_call_operand.vmem [shape: f32[3,4,8], index: 3, kind: input, shape index: {}]   ;;  %s2393_s4 = inlined_call_operand.vmem [shape: f32[1,8], index: 4, kind: input, shape index: {}]   ;;  %s2394_s5 = inlined_call_operand.vmem [shape: f32[2,1,64,8], index: 5, kind: output, shape index: {}]  }
   0x1   :  { %s2079_s20 = smov 0  }
   0x2 LB: > { %s34_s21 = sadd.s32 1, %s2037_s19  ;;  %p1723_p0 = scmp.ge.s32.totalorder %s2041_s20, 1  ;;  %s2041_s20 = sphi %s2079_s20, %s15_s20   ;;  %s2037_s19 = sphi %s2077_s19, %s2396_s19   ;;  %s2033_s18 = sphi %s2075_s18, %s2395_s18  }
   0x3   : > { %p36_p1 = scmp.ge.s32.totalorder %s34_s21, 2  ;;  %p280_p2 = scmp.lt.s32.totalorder %s2041_s20, 3 }
   0x5   : > { %s2398_s21 = smov (%p36_p1, %s34_s21), 0  ;;  %p281_p3 = pnand %p1723_p0, %p280_p2 }
   0x6   : > { %p355_p4 = scmp.lt.s32.totalorder (!%p281_p3), %s2033_s18, 1 }
   0x7   : > { %284 = sbr.rel (%p281_p3) target bundleno = 295 (0x127), region = 40 }
   0xc   : > { %v415_v0 = vld [vmem:[%s2391_s2] sm:$0xff]  ;;  %v1753_v1 = vld [vmem:[%s2391_s2 + $0x8] sm:$0xff]  ;;  %vm596_vm0 = vcmask 1043456   ;;  %s2400_s18 = smov (!%p355_p4, %s2033_s18), 1  ;;  %vm416_vm1 = vcmask 64512   ;;  %vm571_vm2 = vcmask 31744  }
   0xd   : > { %v570_v2 = vld [vmem:[%s2392_s3] sm:$0xf]  ;;  %1878 = vmatprep.subr.mxu0 %v415_v0  ;;  %v1770_v3 = vld [vmem:[%s2392_s3 + $0x4] sm:$0xf]  ;;  %s1990_s30 = smul.u32 288, %s2400_s18  ;;  %v2043_v12 = vmov 0.0  }
   0xe   : > { %1879 = vmatpush3.msra.mxu0 %v415_v0  ;;  %1892 = vmatprep.subr.msk.mxu1 %vm596_vm0, %v570_v2  ;;  %v1787_v24 = vld [vmem:[%s2391_s2 + $0x10] sm:$0xff]  ;;  %v1802_v27 = vld [vmem:[%s2392_s3 + $0x8] sm:$0xf]  ;;  %vm2044_vm3 = vmmov 0   ;;  %s1821_s23 = sshll.u32 %s2400_s18, 6 }
   0xf   : > { %1906 = vmatprep.subr.mxu0 %v1753_v1  ;;  %1893 = vmatpush3.msk.msra.mxu1 %vm596_vm0, %v570_v2  ;;  %s2116_s8 = scalar_lea.vmem %s2389_s0, %s1990_s30  ;;  %v1813_v39 = vld [vmem:[%s2392_s3 + $0x8] sm:$0xf]  ;;  %s1820_s15 = sadd.s32 256, %s1990_s30 }
  0x10   : > { %1920 = vmatprep.subr.msk.mxu1 %vm596_vm0, %v1770_v3  ;;  %v407_v4 = vld [vmem:[%s2116_s8] sm:$0xff]  ;;  %v1745_v20 = vld [vmem:[%s2116_s8 + $0x10] sm:$0xff]  ;;  %s381_s22 = scalar_lea.vmem %s2390_s1, %s1820_s15  ;;  %s2356_s18 = scalar_lea.vmem %s2394_s5, %s1821_s23 }
  0x11   : > { %v2120_v5 = vld [vmem:[%s2116_s8 + $0x20] sm:$0xff]  ;;  %1880 = vmatprep.mubr.msk.f32.mxu0 %vm416_vm1, %v407_v4  ;;  %v1762_v22 = vld [vmem:[%s2116_s8 + $0x11] sm:$0xff] }
  0x12   : > { %v2123_v6 = vld [vmem:[%s2116_s8 + $0x40] sm:$0xff]  ;;  %1881 = vmatmul.mubr.msk.f32.vlgmr.msra.gmra.mxu0 %vm416_vm1, %v2120_v5  ;;  %v1746_v23 = vld [vmem:[%s2116_s8 + $0x30] sm:$0xff] }
  0x13   : > { %v562_v7 = vld [vmem:[%s2116_s8 + $0x1] sm:$0xff]  ;;  %1907 = vmatpush3.msra.mxu0 %v1753_v1  ;;  %1883 = vmatprep.mubr.msk.f32.mxu0 %vm416_vm1, %v2123_v6  ;;  %v1747_v25 = vld [vmem:[%s2116_s8 + $0x50] sm:$0xff] }
  0x14   : > { %1894 = vmatprep.mubr.msk.f32.mxu1 %vm571_vm2, %v562_v7  ;;  %v2131_v8 = vld [vmem:[%s2116_s8 + $0x21] sm:$0xff]  ;;  %1934 = vmatprep.subr.mxu0 %v2043_v12  ;;  %v1763_v26 = vld [vmem:[%s2116_s8 + $0x31] sm:$0xff] }
  0x15   : > { %v2136_v9 = vld [vmem:[%s2116_s8 + $0x60] sm:$0xff]  ;;  %1895 = vmatmul.mubr.msk.f32.vlgmr.msra.gmra.mxu1 %vm571_vm2, %v2131_v8  ;;  %v1764_v28 = vld [vmem:[%s2116_s8 + $0x51] sm:$0xff] }
  0x16   : > { %v2139_v10 = vld [vmem:[%s2116_s8 + $0x41] sm:$0xff]  ;;  %1921 = vmatpush3.msk.msra.mxu1 %vm596_vm0, %v1770_v3  ;;  %1884 = vmatmul.mubr.msk.f32.gmra.mxu0 %vm416_vm1, %v2136_v9  ;;  %v1748_v29 = vld [vmem:[%s2116_s8 + $0x70] sm:$0xff] }
  0x17   : > { %v2142_v11 = vld [vmem:[%s2116_s8 + $0x80] sm:$0xff]  ;;  %1897 = vmatprep.mubr.msk.f32.mxu1 %vm571_vm2, %v2139_v10  ;;  %1957 = vmatprep.subr.mxu1 %v2043_v12  ;;  %v1749_v30 = vld [vmem:[%s2116_s8 + $0x90] sm:$0xff] }
  0x18   : > { %v2151_v13 = vld [vmem:[%s2116_s8 + $0x61] sm:$0xff]  ;;  %1886 = vmatprep.mubr.msk.f32.mxu0 %vm416_vm1, %v2142_v11  ;;  %v1765_v31 = vld [vmem:[%s2116_s8 + $0x71] sm:$0xff] }
  0x19   : > { %v2156_v14 = vld [vmem:[%s2116_s8 + $0x81] sm:$0xff]  ;;  %1898 = vmatmul.mubr.msk.f32.gmra.mxu1 %vm571_vm2, %v2151_v13  ;;  %v1766_v32 = vld [vmem:[%s2116_s8 + $0x91] sm:$0xff] }
  0x1a   : > { %v2162_v15 = vld [vmem:[%s2116_s8 + $0xa0] sm:$0xff]  ;;  %1900 = vmatprep.mubr.msk.f32.mxu1 %vm571_vm2, %v2156_v14  ;;  %v1750_v33 = vld [vmem:[%s2116_s8 + $0xb0] sm:$0xff] }
  0x1b   : > { %v2165_v16 = vld [vmem:[%s2116_s8 + $0xc0] sm:$0xff]  ;;  %1887 = vmatmul.mubr.msk.f32.gmra.mxu0 %vm416_vm1, %v2162_v15  ;;  %v1751_v34 = vld [vmem:[%s2116_s8 + $0xd0] sm:$0xff] }
  0x1c   : > { %v2172_v17 = vld [vmem:[%s2116_s8 + $0xa1] sm:$0xff]  ;;  %1889 = vmatprep.mubr.msk.f32.mxu0 %vm416_vm1, %v2165_v16  ;;  %v1767_v35 = vld [vmem:[%s2116_s8 + $0xb1] sm:$0xff] }
  0x1d   : > { %v2177_v18 = vld [vmem:[%s2116_s8 + $0xc1] sm:$0xff]  ;;  %1901 = vmatmul.mubr.msk.f32.gmra.mxu1 %vm571_vm2, %v2172_v17  ;;  %v1768_v36 = vld [vmem:[%s2116_s8 + $0xd1] sm:$0xff] }
  0x1e   : > { %v2182_v19 = vld [vmem:[%s2116_s8 + $0xe0] sm:$0xff]  ;;  %1903 = vmatprep.mubr.msk.f32.mxu1 %vm571_vm2, %v2177_v18  ;;  %v1752_v37 = vld [vmem:[%s2116_s8 + $0xf0] sm:$0xff] }
  0x1f   : > { %v2190_v21 = vld [vmem:[%s2116_s8 + $0xe1] sm:$0xff]  ;;  %1890 = vmatmul.mubr.msk.f32.gmra.mxu0 %vm416_vm1, %v2182_v19  ;;  %v1769_v38 = vld [vmem:[%s2116_s8 + $0xf1] sm:$0xff] }
  0x20   : > { %1908 = vmatprep.mubr.msk.f32.mxu0 %vm416_vm1, %v1745_v20  ;;  %v1358_v40 = vld [vmem:[%s381_s22] sm:$0xff] }
  0x21   : > { %1904 = vmatmul.mubr.msk.f32.gmra.mxu1 %vm571_vm2, %v2190_v21  ;;  %v1436_v41 = vld [vmem:[%s381_s22 + $0x1] sm:$0xff] }
  0x22   : > { %1922 = vmatprep.mubr.msk.f32.mxu1 %vm571_vm2, %v1762_v22 }
  0x23   : > { %1909 = vmatmul.mubr.msk.f32.vlgmr.msra.gmra.mxu0 %vm416_vm1, %v1746_v23 }
  0x24   : > { %1935 = vmatpush3.msra.mxu0 %v1787_v24  ;;  %1911 = vmatprep.mubr.msk.f32.mxu0 %vm416_vm1, %v1747_v25 }
  0x25   : > { %1923 = vmatmul.mubr.msk.f32.vlgmr.msra.gmra.mxu1 %vm571_vm2, %v1763_v26  ;;  %1980 = vmatprep.subr.mxu0 %v2043_v12 }
  0x26   : > { %1958 = vmatpush3.msk.msra.mxu1 %vm596_vm0, %v1802_v27  ;;  %1925 = vmatprep.mubr.msk.f32.mxu1 %vm571_vm2, %v1764_v28 }
  0x27   : > { %1912 = vmatmul.mubr.msk.f32.gmra.mxu0 %vm416_vm1, %v1748_v29  ;;  %1985 = vmatprep.subr.mxu1 %v2043_v12 }
  0x28   : > { %1914 = vmatprep.mubr.msk.f32.mxu0 %vm416_vm1, %v1749_v30 }
  0x29   : > { %1926 = vmatmul.mubr.msk.f32.gmra.mxu1 %vm571_vm2, %v1765_v31 }
  0x2a   : > { %1928 = vmatprep.mubr.msk.f32.mxu1 %vm571_vm2, %v1766_v32 }
  0x2b   : > { %1915 = vmatmul.mubr.msk.f32.gmra.mxu0 %vm416_vm1, %v1750_v33 }
  0x2c   : > { %1917 = vmatprep.mubr.msk.f32.mxu0 %vm416_vm1, %v1751_v34 }
  0x2d   : > { %1929 = vmatmul.mubr.msk.f32.gmra.mxu1 %vm571_vm2, %v1767_v35 }
  0x2e   : > { %1931 = vmatprep.mubr.msk.f32.mxu1 %vm571_vm2, %v1768_v36 }
  0x2f   : > { %1918 = vmatmul.mubr.msk.f32.gmra.mxu0 %vm416_vm1, %v1752_v37 }
  0x30   : > { %1936 = vmatprep.mubr.msk.f32.mxu0 %vm2044_vm3, %v2043_v12 }
  0x31   : > { %1932 = vmatmul.mubr.msk.f32.gmra.mxu1 %vm571_vm2, %v1769_v38 }
  0x32   : > { %1959 = vmatprep.mubr.msk.f32.mxu1 %vm2044_vm3, %v2043_v12 }
  0x33   : > { %1937 = vmatmul.mubr.msk.f32.vlgmr.msra.gmra.mxu0 %vm416_vm1, %v2120_v5 }
  0x34   : > { %1981 = vmatpush3.msra.mxu0 %v1787_v24  ;;  %1939 = vmatprep.mubr.msk.f32.mxu0 %vm2044_vm3, %v2043_v12 }
  0x35   : > { %1960 = vmatmul.mubr.msk.f32.vlgmr.msra.gmra.mxu1 %vm571_vm2, %v2131_v8 }
  0x36   : > { %1986 = vmatpush3.msk.msra.mxu1 %vm596_vm0, %v1813_v39  ;;  %1962 = vmatprep.mubr.msk.f32.mxu1 %vm2044_vm3, %v2043_v12 }
  0x37   : > { %1940 = vmatmul.mubr.msk.f32.gmra.mxu0 %vm416_vm1, %v2123_v6 }
  0x38   : > { %1942 = vmatprep.mubr.msk.f32.mxu0 %vm2044_vm3, %v2043_v12 }
  0x39   : > { %1963 = vmatmul.mubr.msk.f32.gmra.mxu1 %vm571_vm2, %v2139_v10 }
  0x3a   : > { %1965 = vmatprep.mubr.msk.f32.mxu1 %vm2044_vm3, %v2043_v12 }
  0x3b   : > { %1943 = vmatmul.mubr.msk.f32.gmra.mxu0 %vm416_vm1, %v2136_v9 }
  0x3c   : > { %1945 = vmatprep.mubr.msk.f32.mxu0 %vm2044_vm3, %v2043_v12 }
  0x3d   : > { %1966 = vmatmul.mubr.msk.f32.gmra.mxu1 %vm571_vm2, %v2151_v13 }
  0x3e   : > { %1968 = vmatprep.mubr.msk.f32.mxu1 %vm2044_vm3, %v2043_v12 }
  0x3f   : > { %1946 = vmatmul.mubr.msk.f32.gmra.mxu0 %vm416_vm1, %v2142_v11 }
  0x40   : > { %1948 = vmatprep.mubr.msk.f32.mxu0 %vm2044_vm3, %v2043_v12 }
  0x41   : > { %1969 = vmatmul.mubr.msk.f32.gmra.mxu1 %vm571_vm2, %v2156_v14 }
  0x42   : > { %1971 = vmatprep.mubr.msk.f32.mxu1 %vm2044_vm3, %v2043_v12 }
  0x43   : > { %1949 = vmatmul.mubr.msk.f32.gmra.mxu0 %vm416_vm1, %v2162_v15 }
  0x44   : > { %1951 = vmatprep.mubr.msk.f32.mxu0 %vm2044_vm3, %v2043_v12 }
  0x45   : > { %1972 = vmatmul.mubr.msk.f32.gmra.mxu1 %vm571_vm2, %v2172_v17 }
  0x46   : > { %1974 = vmatprep.mubr.msk.f32.mxu1 %vm2044_vm3, %v2043_v12 }
  0x47   : > { %1952 = vmatmul.mubr.msk.f32.gmra.mxu0 %vm416_vm1, %v2165_v16 }
  0x48   : > { %1954 = vmatprep.mubr.msk.f32.mxu0 %vm2044_vm3, %v2043_v12 }
  0x49   : > { %1975 = vmatmul.mubr.msk.f32.gmra.mxu1 %vm571_vm2, %v2177_v18 }
  0x4a   : > { %1977 = vmatprep.mubr.msk.f32.mxu1 %vm2044_vm3, %v2043_v12 }
  0x4b   : > { %1955 = vmatmul.mubr.msk.f32.gmra.mxu0 %vm416_vm1, %v2182_v19 }
  0x4c   : > { %1982 = vmatprep.mubr.msk.f32.mxu0 %vm2044_vm3, %v2043_v12 }
  0x4d   : > { %1978 = vmatmul.mubr.msk.f32.gmra.mxu1 %vm571_vm2, %v2190_v21 }
  0x4e   : > { %1987 = vmatprep.mubr.msk.f32.mxu1 %vm2044_vm3, %v2043_v12 }
  0x4f   : > { %1983 = vmatmul.mubr.msk.f32.vlgmr.msra.gmra.mxu0 %vm416_vm1, %v1358_v40 }
  0x51   : > { %1988 = vmatmul.mubr.msk.f32.vlgmr.msra.gmra.mxu1 %vm571_vm2, %v1436_v41 }
  0xd2   : > { %v1882_v42 = vpop.f32.mrf.mxu0 }
  0xd3   : > { %547 = vst.msk [vmem:[#allocation2 + $0x8] sm:$0xff] %vm416_vm1, %v1882_v42 }
  0xd4   : > { %v507_v43 = vpop.f32.mrf.mxu0 }
  0xd5   : > { %v1896_v44 = vpop.f32.mrf.mxu1  ;;  %546 = vst.msk [vmem:[#allocation2] sm:$0xff] %vm416_vm1, %v507_v43 }
  0xd6   : > { %v1885_v45 = vpop.f32.mrf.mxu0 }
  0xd7   : > { %v666_v46 = vpop.f32.mrf.mxu1  ;;  %549 = vst.msk [vmem:[#allocation2 + $0x18] sm:$0xff] %vm416_vm1, %v1885_v45 }
  0xd8   : > { %v517_v47 = vpop.f32.mrf.mxu0 }
  0xd9   : > { %v1899_v48 = vpop.f32.mrf.mxu1  ;;  %548 = vst.msk [vmem:[#allocation2 + $0x10] sm:$0xff] %vm416_vm1, %v517_v47 }
  0xda   : > { %v555_v50 = vld [vmem:[#allocation2 + $0x8] sm:$0xff] }
  0xdb   : > { %v1888_v49 = vpop.f32.mrf.mxu0  ;;  %v676_v51 = vpop.f32.mrf.mxu1  ;;  %v706_v52 = vadd.f32 %v1896_v44, %v555_v50 }
  0xdc   : > { %551 = vst.msk [vmem:[#allocation2 + $0x28] sm:$0xff] %vm416_vm1, %v1888_v49  ;;  %v554_v54 = vld [vmem:[#allocation2] sm:$0xff] }
  0xdd   : > { %v527_v53 = vpop.f32.mrf.mxu0  ;;  %v1902_v55 = vpop.f32.mrf.mxu1  ;;  %714 = vst.msk [vmem:[#allocation2 + $0x8] sm:$0xff] %vm416_vm1, %v706_v52  ;;  %v705_v56 = vadd.f32 %v666_v46, %v554_v54 }
  0xde   : > { %550 = vst.msk [vmem:[#allocation2 + $0x20] sm:$0xff] %vm416_vm1, %v527_v53  ;;  %v557_v58 = vld [vmem:[#allocation2 + $0x18] sm:$0xff] }
  0xdf   : > { %v1891_v57 = vpop.f32.mrf.mxu0  ;;  %v686_v59 = vpop.f32.mrf.mxu1  ;;  %713 = vst.msk [vmem:[#allocation2] sm:$0xff] %vm416_vm1, %v705_v56  ;;  %v708_v60 = vadd.f32 %v1899_v48, %v557_v58 }
  0xe0   : > { %553 = vst.msk [vmem:[#allocation2 + $0x38] sm:$0xff] %vm416_vm1, %v1891_v57  ;;  %v556_v62 = vld [vmem:[#allocation2 + $0x10] sm:$0xff] }
  0xe1   : > { %v537_v61 = vpop.f32.mrf.mxu0  ;;  %v1905_v63 = vpop.f32.mrf.mxu1  ;;  %716 = vst.msk [vmem:[#allocation2 + $0x18] sm:$0xff] %vm416_vm1, %v708_v60  ;;  %v707_v0 = vadd.f32 %v676_v51, %v556_v62 }
  0xe2   : > { %552 = vst.msk [vmem:[#allocation2 + $0x30] sm:$0xff] %vm416_vm1, %v537_v61 }
  0xe3   : > { %v559_v1 = vld [vmem:[#allocation2 + $0x28] sm:$0xff]  ;;  %v1910_v2 = vpop.f32.mrf.mxu0  ;;  %v696_v3 = vpop.f32.mrf.mxu1  ;;  %715 = vst.msk [vmem:[#allocation2 + $0x10] sm:$0xff] %vm416_vm1, %v707_v0 }
  0xe4   : > { %v710_v4 = vadd.f32 %v1902_v55, %v559_v1  ;;  %v722_v5 = vld [vmem:[#allocation2 + $0x8] sm:$0xff] }
  0xe5   : > { %v558_v6 = vld [vmem:[#allocation2 + $0x20] sm:$0xff]  ;;  %v830_v7 = vpop.f32.mrf.mxu0  ;;  %v1924_v8 = vpop.f32.mrf.mxu1  ;;  %v870_v9 = vadd.f32 %v1910_v2, %v722_v5 }
  0xe6   : > { %718 = vst.msk [vmem:[#allocation2 + $0x28] sm:$0xff] %vm416_vm1, %v710_v4  ;;  %v709_v10 = vadd.f32 %v686_v59, %v558_v6  ;;  %v721_v11 = vld [vmem:[#allocation2] sm:$0xff] }
  0xe7   : > { %v561_v12 = vld [vmem:[#allocation2 + $0x38] sm:$0xff]  ;;  %v1913_v13 = vpop.f32.mrf.mxu0  ;;  %v996_v14 = vpop.f32.mrf.mxu1  ;;  %878 = vst.msk [vmem:[#allocation2 + $0x8] sm:$0xff] %vm416_vm1, %v870_v9  ;;  %v869_v15 = vadd.f32 %v830_v7, %v721_v11 }
  0xe8   : > { %717 = vst.msk [vmem:[#allocation2 + $0x20] sm:$0xff] %vm416_vm1, %v709_v10  ;;  %v712_v16 = vadd.f32 %v1905_v63, %v561_v12  ;;  %v724_v17 = vld [vmem:[#allocation2 + $0x18] sm:$0xff] }
  0xe9   : > { %v560_v18 = vld [vmem:[#allocation2 + $0x30] sm:$0xff]  ;;  %v840_v19 = vpop.f32.mrf.mxu0  ;;  %v1927_v20 = vpop.f32.mrf.mxu1  ;;  %877 = vst.msk [vmem:[#allocation2] sm:$0xff] %vm416_vm1, %v869_v15  ;;  %v872_v21 = vadd.f32 %v1913_v13, %v724_v17 }
  0xea   : > { %720 = vst.msk [vmem:[#allocation2 + $0x38] sm:$0xff] %vm416_vm1, %v712_v16  ;;  %v711_v22 = vadd.f32 %v696_v3, %v560_v18  ;;  %v723_v23 = vld [vmem:[#allocation2 + $0x10] sm:$0xff] }
  0xeb   : > { %v1916_v24 = vpop.f32.mrf.mxu0  ;;  %v1006_v25 = vpop.f32.mrf.mxu1  ;;  %880 = vst.msk [vmem:[#allocation2 + $0x18] sm:$0xff] %vm416_vm1, %v872_v21  ;;  %v871_v26 = vadd.f32 %v840_v19, %v723_v23 }
  0xec   : > { %719 = vst.msk [vmem:[#allocation2 + $0x30] sm:$0xff] %vm416_vm1, %v711_v22 }
  0xed   : > { %v726_v27 = vld [vmem:[#allocation2 + $0x28] sm:$0xff]  ;;  %v850_v28 = vpop.f32.mrf.mxu0  ;;  %v1930_v29 = vpop.f32.mrf.mxu1  ;;  %879 = vst.msk [vmem:[#allocation2 + $0x10] sm:$0xff] %vm416_vm1, %v871_v26 }
  0xee   : > { %v874_v30 = vadd.f32 %v1916_v24, %v726_v27  ;;  %v886_v31 = vld [vmem:[#allocation2 + $0x8] sm:$0xff] }
  0xef   : > { %v725_v32 = vld [vmem:[#allocation2 + $0x20] sm:$0xff]  ;;  %v1919_v33 = vpop.f32.mrf.mxu0  ;;  %v1016_v34 = vpop.f32.mrf.mxu1  ;;  %v1036_v35 = vadd.f32 %v1924_v8, %v886_v31 }
  0xf0   : > { %882 = vst.msk [vmem:[#allocation2 + $0x28] sm:$0xff] %vm416_vm1, %v874_v30  ;;  %v873_v36 = vadd.f32 %v850_v28, %v725_v32  ;;  %v885_v37 = vld [vmem:[#allocation2] sm:$0xff] }
  0xf1   : > { %v728_v38 = vld [vmem:[#allocation2 + $0x38] sm:$0xff]  ;;  %v860_v39 = vpop.f32.mrf.mxu0  ;;  %v1933_v40 = vpop.f32.mrf.mxu1  ;;  %1044 = vst.msk [vmem:[#allocation2 + $0x8] sm:$0xff] %vm416_vm1, %v1036_v35  ;;  %v1035_v41 = vadd.f32 %v996_v14, %v885_v37  ;;  %v1816_v37 = vld [vmem:[%s2393_s4] ss:$0 sm:$0xff] }
  0xf2   : > { %881 = vst.msk [vmem:[#allocation2 + $0x20] sm:$0xff] %vm416_vm1, %v873_v36  ;;  %v876_v42 = vadd.f32 %v1919_v33, %v728_v38  ;;  %v888_v43 = vld [vmem:[#allocation2 + $0x18] sm:$0xff] }
  0xf3   : > { %v727_v44 = vld [vmem:[#allocation2 + $0x30] sm:$0xff]  ;;  %v1155_v45 = vpop.f32.mrf.mxu0  ;;  %v1026_v46 = vpop.f32.mrf.mxu1  ;;  %1043 = vst.msk [vmem:[#allocation2] sm:$0xff] %vm416_vm1, %v1035_v41  ;;  %v1038_v47 = vadd.f32 %v1927_v20, %v888_v43 }
  0xf4   : > { %884 = vst.msk [vmem:[#allocation2 + $0x38] sm:$0xff] %vm416_vm1, %v876_v42  ;;  %v875_v48 = vadd.f32 %v860_v39, %v727_v44  ;;  %v887_v49 = vld [vmem:[#allocation2 + $0x10] sm:$0xff] }
  0xf5   : > { %v1938_v50 = vpop.f32.mrf.mxu0  ;;  %v1309_v51 = vpop.f32.mrf.mxu1  ;;  %1046 = vst.msk [vmem:[#allocation2 + $0x18] sm:$0xff] %vm416_vm1, %v1038_v47  ;;  %v1037_v52 = vadd.f32 %v1006_v25, %v887_v49 }
  0xf6   : > { %883 = vst.msk [vmem:[#allocation2 + $0x30] sm:$0xff] %vm416_vm1, %v875_v48 }
  0xf7   : > { %v890_v53 = vld [vmem:[#allocation2 + $0x28] sm:$0xff]  ;;  %v1160_v54 = vpop.f32.mrf.mxu0  ;;  %v1961_v55 = vpop.f32.mrf.mxu1  ;;  %1045 = vst.msk [vmem:[#allocation2 + $0x10] sm:$0xff] %vm416_vm1, %v1037_v52 }
  0xf8   : > { %v1040_v56 = vadd.f32 %v1930_v29, %v890_v53  ;;  %v1052_v58 = vld [vmem:[#allocation2 + $0x8] sm:$0xff] }
  0xf9   : > { %v889_v57 = vld [vmem:[#allocation2 + $0x20] sm:$0xff]  ;;  %v1941_v59 = vpop.f32.mrf.mxu0  ;;  %v1314_v60 = vpop.f32.mrf.mxu1  ;;  %v1190_v62 = vadd.f32 %v1160_v54, %v1052_v58 }
  0xfa   : > { %1048 = vst.msk [vmem:[#allocation2 + $0x28] sm:$0xff] %vm416_vm1, %v1040_v56  ;;  %v1039_v61 = vadd.f32 %v1016_v34, %v889_v57  ;;  %v1051_v63 = vld [vmem:[#allocation2] sm:$0xff] }
  0xfb   : > { %v892_v0 = vld [vmem:[#allocation2 + $0x38] sm:$0xff]  ;;  %v1165_v1 = vpop.f32.mrf.mxu0  ;;  %v1964_v2 = vpop.f32.mrf.mxu1  ;;  %v1189_v3 = vadd.f32 %v1155_v45, %v1051_v63  ;;  %1197 = vst.msk [vmem:[#allocation2 + $0x8] sm:$0xff] %vm416_vm1, %v1190_v62 }
  0xfc   : > { %1047 = vst.msk [vmem:[#allocation2 + $0x20] sm:$0xff] %vm416_vm1, %v1039_v61  ;;  %v1042_v4 = vadd.f32 %v1933_v40, %v892_v0  ;;  %v1054_v10 = vld [vmem:[#allocation2 + $0x18] sm:$0xff] }
  0xfd   : > { %v891_v5 = vld [vmem:[#allocation2 + $0x30] sm:$0xff]  ;;  %v1944_v6 = vpop.f32.mrf.mxu0  ;;  %v1319_v7 = vpop.f32.mrf.mxu1  ;;  %1196 = vst.msk [vmem:[#allocation2] sm:$0xff] %vm416_vm1, %v1189_v3 }
  0xfe   : > { %1050 = vst.msk [vmem:[#allocation2 + $0x38] sm:$0xff] %vm416_vm1, %v1042_v4  ;;  %v1041_v8 = vadd.f32 %v1026_v46, %v891_v5  ;;  %v1053_v9 = vld [vmem:[#allocation2 + $0x10] sm:$0xff] }
  0xff   : > { %v1170_v11 = vpop.f32.mrf.mxu0  ;;  %v1967_v12 = vpop.f32.mrf.mxu1  ;;  %v1191_v13 = vadd.f32 %v1165_v1, %v1053_v9 }
 0x100   : > { %1049 = vst.msk [vmem:[#allocation2 + $0x30] sm:$0xff] %vm416_vm1, %v1041_v8  ;;  %v1192_v14 = vadd.f32 %v1170_v11, %v1054_v10 }
 0x101   : > { %v1947_v15 = vpop.f32.mrf.mxu0  ;;  %v1324_v16 = vpop.f32.mrf.mxu1  ;;  %1198 = vst.msk [vmem:[#allocation2 + $0x10] sm:$0xff] %vm416_vm1, %v1191_v13  ;;  %v1056_v27 = vld [vmem:[#allocation2 + $0x28] sm:$0xff] }
 0x102   : > { %1199 = vst.msk [vmem:[#allocation2 + $0x18] sm:$0xff] %vm416_vm1, %v1192_v14  ;;  %v1204_v17 = vld [vmem:[#allocation2 + $0x8] sm:$0xff] }
 0x103   : > { %v1055_v18 = vld [vmem:[#allocation2 + $0x20] sm:$0xff]  ;;  %v1175_v19 = vpop.f32.mrf.mxu0  ;;  %v1970_v20 = vpop.f32.mrf.mxu1  ;;  %v1344_v21 = vadd.f32 %v1314_v60, %v1204_v17 }
 0x104   : > { %v1193_v22 = vadd.f32 %v1175_v19, %v1055_v18  ;;  %v1203_v23 = vld [vmem:[#allocation2] sm:$0xff] }
 0x105   : > { %v1950_v24 = vpop.f32.mrf.mxu0  ;;  %v1329_v25 = vpop.f32.mrf.mxu1  ;;  %v1343_v26 = vadd.f32 %v1309_v51, %v1203_v23  ;;  %1351 = vst.msk [vmem:[#allocation2 + $0x8] sm:$0xff] %vm416_vm1, %v1344_v21  ;;  %v1357_v49 = vld [vmem:[#allocation2 + $0x38] sm:$0xff] }
 0x106   : > { %1200 = vst.msk [vmem:[#allocation2 + $0x20] sm:$0xff] %vm416_vm1, %v1193_v22 }
 0x107   : > { %v1180_v28 = vpop.f32.mrf.mxu0  ;;  %v1973_v29 = vpop.f32.mrf.mxu1  ;;  %1350 = vst.msk [vmem:[#allocation2] sm:$0xff] %vm416_vm1, %v1343_v26  ;;  %v1057_v38 = vld [vmem:[#allocation2 + $0x30] sm:$0xff] }
 0x108   : > { %v1194_v30 = vadd.f32 %v1180_v28, %v1056_v27  ;;  %v1205_v31 = vld [vmem:[#allocation2 + $0x10] sm:$0xff] }
 0x109   : > { %v1206_v32 = vld [vmem:[#allocation2 + $0x18] sm:$0xff]  ;;  %v1953_v33 = vpop.f32.mrf.mxu0  ;;  %v1334_v34 = vpop.f32.mrf.mxu1  ;;  %v1345_v35 = vadd.f32 %v1319_v7, %v1205_v31 }
 0x10a   : > { %1201 = vst.msk [vmem:[#allocation2 + $0x28] sm:$0xff] %vm416_vm1, %v1194_v30  ;;  %v1346_v36 = vadd.f32 %v1324_v16, %v1206_v32 }
 0x10b   : > { %v1185_v39 = vpop.f32.mrf.mxu0  ;;  %v1976_v40 = vpop.f32.mrf.mxu1  ;;  %1352 = vst.msk [vmem:[#allocation2 + $0x10] sm:$0xff] %vm416_vm1, %v1345_v35 }
 0x10c   : > { %1353 = vst.msk [vmem:[#allocation2 + $0x18] sm:$0xff] %vm416_vm1, %v1346_v36  ;;  %v1195_v41 = vadd.f32 %v1185_v39, %v1057_v38  ;;  %v1517_v42 = vld [vmem:[#allocation2 + $0x8] sm:$0xff] }
 0x10d   : > { %v1207_v43 = vld [vmem:[#allocation2 + $0x20] sm:$0xff]  ;;  %v1956_v44 = vpop.f32.mrf.mxu0  ;;  %v1339_v45 = vpop.f32.mrf.mxu1  ;;  %v1532_v46 = vadd.f32 %v1816_v37, %v1517_v42 }
 0x10e   : > { %1202 = vst.msk [vmem:[#allocation2 + $0x30] sm:$0xff] %vm416_vm1, %v1195_v41  ;;  %v1347_v47 = vadd.f32 %v1329_v25, %v1207_v43  ;;  %v1516_v48 = vld [vmem:[#allocation2] sm:$0xff] }
 0x10f   : > { %v1429_v50 = vpop.f32.mrf.mxu0  ;;  %v1979_v51 = vpop.f32.mrf.mxu1  ;;  %v1531_v52 = vadd.f32 %v1816_v37, %v1516_v48  ;;  %1540 = vst.msk [vmem:[%s2356_s18 + $0x8] sm:$0xff] %vm416_vm1, %v1532_v46 }
 0x110   : > { %1354 = vst.msk [vmem:[#allocation2 + $0x20] sm:$0xff] %vm416_vm1, %v1347_v47  ;;  %v1433_v53 = vadd.f32 %v1429_v50, %v1357_v49 }
 0x111   : > { %v1208_v54 = vld [vmem:[#allocation2 + $0x28] sm:$0xff]  ;;  %v1984_v55 = vpop.f32.mrf.mxu0  ;;  %v1510_v56 = vpop.f32.mrf.mxu1  ;;  %1539 = vst.msk [vmem:[%s2356_s18] sm:$0xff] %vm416_vm1, %v1531_v52 }
 0x112   : > { %v1348_v57 = vadd.f32 %v1334_v34, %v1208_v54  ;;  %1434 = vst.msk [vmem:[#allocation2 + $0x38] sm:$0xff] %vm416_vm1, %v1433_v53  ;;  %v1518_v58 = vld [vmem:[#allocation2 + $0x10] sm:$0xff] }
 0x113   : > { %v1519_v59 = vld [vmem:[#allocation2 + $0x18] sm:$0xff]  ;;  %v1989_v60 = vpop.f32.mrf.mxu1  ;;  %v1533_v61 = vadd.f32 %v1816_v37, %v1518_v58 }
 0x114   : > { %v1534_v62 = vadd.f32 %v1816_v37, %v1519_v59  ;;  %1355 = vst.msk [vmem:[#allocation2 + $0x28] sm:$0xff] %vm416_vm1, %v1348_v57 }
 0x115   : > { %v1209_v63 = vld [vmem:[#allocation2 + $0x30] sm:$0xff]  ;;  %1541 = vst.msk [vmem:[%s2356_s18 + $0x10] sm:$0xff] %vm416_vm1, %v1533_v61 }
 0x116   : > { %1542 = vst.msk [vmem:[%s2356_s18 + $0x18] sm:$0xff] %vm416_vm1, %v1534_v62  ;;  %v1349_v0 = vadd.f32 %v1339_v45, %v1209_v63 }
 0x117   : > { %v1520_v1 = vld [vmem:[#allocation2 + $0x20] sm:$0xff] }
 0x118   : > { %v1535_v2 = vadd.f32 %v1816_v37, %v1520_v1  ;;  %1356 = vst.msk [vmem:[#allocation2 + $0x30] sm:$0xff] %vm416_vm1, %v1349_v0 }
 0x119   : > { %v1435_v3 = vld [vmem:[#allocation2 + $0x38] sm:$0xff] }
 0x11a   : > { %1543 = vst.msk [vmem:[%s2356_s18 + $0x20] sm:$0xff] %vm416_vm1, %v1535_v2  ;;  %v1514_v4 = vadd.f32 %v1510_v56, %v1435_v3 }
 0x11b   : > { %v1521_v5 = vld [vmem:[#allocation2 + $0x28] sm:$0xff] }
 0x11c   : > { %v1536_v6 = vadd.f32 %v1816_v37, %v1521_v5  ;;  %1515 = vst.msk [vmem:[#allocation2 + $0x38] sm:$0xff] %vm416_vm1, %v1514_v4 }
 0x11e   : > { %1544 = vst.msk [vmem:[%s2356_s18 + $0x28] sm:$0xff] %vm416_vm1, %v1536_v6 }
 0x11f   : > { %v1522_v7 = vld [vmem:[#allocation2 + $0x30] sm:$0xff] }
 0x120   : > { %v1537_v8 = vadd.f32 %v1816_v37, %v1522_v7 }
 0x122   : > { %1545 = vst.msk [vmem:[%s2356_s18 + $0x30] sm:$0xff] %vm416_vm1, %v1537_v8 }
 0x123   : > { %v1523_v9 = vld [vmem:[#allocation2 + $0x38] sm:$0xff] }
 0x124   : > { %v1538_v10 = vadd.f32 %v1816_v37, %v1523_v9 }
 0x126   : > { %1546 = vst.msk [vmem:[%s2356_s18 + $0x38] sm:$0xff] %vm416_vm1, %v1538_v10 }
 0x127 PF: > { %s15_s20 = sadd.s32 1, %s2041_s20   ;;  %s2395_s18 = smov %s2037_s19 }
 0x128   : > { %p12_p5 = scmp.ge.s32.totalorder %s15_s20, 4   ;;  %s2396_s19 = smov %s2398_s21 }
 0x12a   :  { %14 = sbr.rel (!%p12_p5) target bundleno = 2 (0x2), region = 88 }

</bundles_post_ra>
